<compile_context>
chip_gen: v5e
topology: v5e:2x2
jax: 0.10.0
libtpu: 0.0.40
codegen_flags: <defaults>
</compile_context>

<pallas_src>
import math
import functools

import jax
import jax.numpy as jnp
from jax.experimental import pallas as pl
from jax.experimental.pallas import tpu as pltpu


def _posenc_add_kernel(x_ref, pe_ref, o_ref):
    # Eval mode: dropout is identity -> just the positional add.
    o_ref[...] = x_ref[...] + pe_ref[...]


def _posenc_dropout_kernel(p_drop, x_ref, pe_ref, u_ref, o_ref):
    # Training mode: (x + pe) followed by inverted dropout with keep prob 1-p.
    y = x_ref[...] + pe_ref[...]
    keep = u_ref[...] >= jnp.float32(p_drop)                 # keep with prob 1 - p
    scale = jnp.float32(1.0 / (1.0 - p_drop))
    # single select + single multiply (scale folded into the select result)
    o_ref[...] = (y * jnp.where(keep, scale, jnp.float32(0.0))).astype(o_ref.dtype)


def _tile_rows(S, n_cols, n_streams, bytes_per_elem=4):
    """Rows per block: as large as possible while keeping all double-buffered
    (tS, n_cols) blocks under ~16 MiB of VMEM; multiple of 8 unless the whole
    sequence fits in one block."""
    budget = 16 * 1024 * 1024
    rows = budget // (2 * n_streams * n_cols * bytes_per_elem)
    rows = max(8, min(int(rows), 1024))
    if rows >= S:
        return S
    return max(8, (rows // 8) * 8)


_COMPILER_PARAMS = pltpu.CompilerParams(
    dimension_semantics=("parallel",),        # shard the seq-axis grid across TCs (v7x)
    vmem_limit_bytes=32 * 1024 * 1024,        # explicit; safe on v5e/v6e/v7x
)


def make_positional_encoding(d_model, dropout=0.1, max_len=500):
    """Returns (pe_buffer, forward_fn). Mirrors the PyTorch module __init__."""
    position = jnp.arange(max_len, dtype=jnp.float32)[:, None]               # (max_len, 1)
    div_term = jnp.exp(jnp.arange(0, d_model, 2, dtype=jnp.float32)
                       * (-math.log(10000.0) / d_model))                     # (d_model/2,)
    angles = position * div_term                                             # (max_len, d/2)
    pe = jnp.zeros((max_len, 1, d_model), dtype=jnp.float32)
    pe = pe.at[:, 0, 0::2].set(jnp.sin(angles))
    pe = pe.at[:, 0, 1::2].set(jnp.cos(angles))

    p_drop = float(dropout)

    def forward(x, *, training=False, seed=0):
        S, B, D = x.shape
        assert D == d_model, "last dim must equal d_model"
        assert S <= max_len, "sequence longer than max_len"
        n_cols = B * D

        # Lane-dense slabs: the fused (batch, d_model) pair maps to the lane axis.
        x2 = x.reshape(S, n_cols)
        pe2 = jnp.broadcast_to(pe[:S].astype(x.dtype), (S, B, D)).reshape(S, n_cols)

        if (not training) or p_drop == 0.0:
            tS = _tile_rows(S, n_cols, n_streams=3)          # x, pe, out
            out2 = pl.pallas_call(
                _posenc_add_kernel,
                out_shape=jax.ShapeDtypeStruct((S, n_cols), x.dtype),
                grid_spec=pl.GridSpec(
                    grid=(pl.cdiv(S, tS),),
                    in_specs=[
                        pl.BlockSpec((tS, n_cols), lambda i: (i, 0)),
                        pl.BlockSpec((tS, n_cols), lambda i: (i, 0)),
                    ],
                    out_specs=pl.BlockSpec((tS, n_cols), lambda i: (i, 0)),
                ),
                compiler_params=_COMPILER_PARAMS,
            )(x2, pe2)
            return out2.reshape(S, B, D)

        # Training path: stream a uniform [0,1) mask source; threshold + scale in-kernel.
        u = jax.random.uniform(jax.random.PRNGKey(seed), (S, n_cols), dtype=jnp.float32)
        tS = _tile_rows(S, n_cols, n_streams=4)              # x, pe, u, out
        kernel = functools.partial(_posenc_dropout_kernel, p_drop)
        out2 = pl.pallas_call(
            kernel,
            out_shape=jax.ShapeDtypeStruct((S, n_cols), x.dtype),
            grid_spec=pl.GridSpec(
                grid=(pl.cdiv(S, tS),),
                in_specs=[
                    pl.BlockSpec((tS, n_cols), lambda i: (i, 0)),
                    pl.BlockSpec((tS, n_cols), lambda i: (i, 0)),
                    pl.BlockSpec((tS, n_cols), lambda i: (i, 0)),
                ],
                out_specs=pl.BlockSpec((tS, n_cols), lambda i: (i, 0)),
            ),
            compiler_params=_COMPILER_PARAMS,
        )(x2, pe2, u)
        return out2.reshape(S, B, D)

    return pe, forward


if __name__ == "__main__":
    d_model = 32
    seq_len = 8
    batch = 2
    p = 0.1

    key = jax.random.PRNGKey(0)
    x = jax.random.normal(key, (seq_len, batch, d_model), dtype=jnp.float32)

    pe, posenc_forward = make_positional_encoding(d_model, dropout=p, max_len=500)

    # Eval-mode forward (dropout == identity): check against pure-JAX reference.
    out_eval = posenc_forward(x, training=False)
    jax.block_until_ready(out_eval)
    ref = x + pe[:seq_len]
    assert out_eval.shape == (seq_len, batch, d_model)
    assert jnp.allclose(out_eval, ref, atol=1e-6), "eval-mode mismatch"

    # Training-mode forward (inverted dropout): every element must be either 0
    # (dropped) or (x + pe) / (1 - p) (kept).
    out_train = posenc_forward(x, training=True, seed=42)
    jax.block_until_ready(out_train)
    assert out_train.shape == (seq_len, batch, d_model)
    scaled = ref / (1.0 - p)
    dropped = jnp.isclose(out_train, 0.0, atol=1e-6)
    kept_ok = jnp.isclose(out_train, scaled, rtol=1e-5, atol=1e-6)
    assert bool(jnp.all(dropped | kept_ok)), "train-mode dropout values mismatch"

    print("KERNEL_OK")
</pallas_src>

<mosaic_0001>
module attributes {stable_mosaic.version = 11 : i64} {
  func.func @_posenc_add_kernel(%arg0: i32, %arg1: memref<8x64xf32, #tpu.memory_space<vmem>>, %arg2: memref<8x64xf32, #tpu.memory_space<vmem>>, %arg3: memref<8x64xf32, #tpu.memory_space<vmem>>) attributes {dimension_semantics = [#tpu.dimension_semantics<parallel>], iteration_bounds = array<i64: 1>, scalar_prefetch = 0 : i64, scratch_operands = 0 : i64, tpu.core_type = #tpu.core_type<tc>, window_params = [{transform_indices = @transform_0, window_bounds = array<i64: 8, 64>}, {transform_indices = @transform_1, window_bounds = array<i64: 8, 64>}, {transform_indices = @transform_2, window_bounds = array<i64: 8, 64>}]} {
    %c0 = arith.constant 0 : index
    %c0_0 = arith.constant 0 : index
    %0 = vector.load %arg1[%c0, %c0_0] : memref<8x64xf32, #tpu.memory_space<vmem>>, vector<8x64xf32>
    %c0_1 = arith.constant 0 : index
    %c0_2 = arith.constant 0 : index
    %1 = vector.load %arg2[%c0_1, %c0_2] : memref<8x64xf32, #tpu.memory_space<vmem>>, vector<8x64xf32>
    %2 = arith.addf %0, %1 : vector<8x64xf32>
    %c0_3 = arith.constant 0 : index
    %c0_4 = arith.constant 0 : index
    %3 = vector.load %arg3[%c0_3, %c0_4] : memref<8x64xf32, #tpu.memory_space<vmem>>, vector<8x64xf32>
    tpu.vector_store %arg3[%c0_3, %c0_4], %2 {strides = array<i32>} : memref<8x64xf32, #tpu.memory_space<vmem>>, vector<8x64xf32>,
    return
  }
  func.func @transform_0(%arg0: i32) -> (i32, i32) {
    %c0_i32 = arith.constant 0 : i32
    %c0_i32_0 = arith.constant 0 : i32
    return %arg0, %c0_i32 : i32, i32
  }
  func.func @transform_1(%arg0: i32) -> (i32, i32) {
    %c0_i32 = arith.constant 0 : i32
    %c0_i32_0 = arith.constant 0 : i32
    return %arg0, %c0_i32 : i32, i32
  }
  func.func @transform_2(%arg0: i32) -> (i32, i32) {
    %c0_i32 = arith.constant 0 : i32
    %c0_i32_0 = arith.constant 0 : i32
    return %arg0, %c0_i32 : i32, i32
  }
}

</mosaic_0001>

<bundles_post_ra>
// kernel: tpu_custom_call.1
= control target key start
LH: loop header
LB: loop body
LE: loop exit
PB: predicated region body
PF: predicated region fallthrough
CT: control target
= control target key end

     0   :  { %7 = vsyncpa [#allocation3], 0  ;;  %s171_s0 = inlined_call_operand.hbm [shape: f32[8,64], index: 0, kind: input, shape index: {}]   ;;  %s172_s1 = inlined_call_operand.hbm [shape: f32[8,64], index: 1, kind: input, shape index: {}]   ;;  %s173_s2 = inlined_call_operand.hbm [shape: f32[8,64], index: 2, kind: output, shape index: {}]  }
   0x1   :  { %8 = vsyncpa [#allocation6], 0 }
   0x2   :  { %9 = vsyncpa [#allocation4], 0  ;;  %s15_s11 = sshll.u32 %s171_s0, 4  ;;  %s144_s12 = smov [#allocation2]   ;;  %s16_s11 = int_to_ptr.hbm [resolvable:$true] %s15_s11 }
   0x3   :  { %s17_s13 = sshll.u32 %s144_s12, 4  ;;  %s26_s16 = sshll.u32 %s172_s1, 4  ;;  %s18_s13 = int_to_ptr.vmem [resolvable:$true] %s17_s13  ;;  %s27_s16 = int_to_ptr.hbm [resolvable:$true] %s26_s16 }
   0x4   :  { %20 = dma.hbm_to_vmem [thread:$0]  %s16_s11, 128, %s18_s13, [#allocation3]  }
   0x5   :  { %s145_s17 = smov [#allocation5]  }
   0x6   :  { %s28_s18 = sshll.u32 %s145_s17, 4  ;;  %s29_s18 = int_to_ptr.vmem [resolvable:$true] %s28_s18 }
   0x7   :  { %31 = dma.hbm_to_vmem [thread:$0]  %s27_s16, 128, %s29_s18, [#allocation6]  }
   0x8   :  { %138 = dma.done.wait [#allocation3], 128  }
   0x9   :  { %139 = vsyncadd [#allocation3], 4294967168 }
   0xa   :  { %140 = dma.done.wait [#allocation6], 128  }
   0xb   :  { %141 = vsyncadd [#allocation6], 4294967168  ;;  %s146_s19 = smov [#allocation7]   ;;  %s52_s22 = sshll.u32 %s173_s2, 4  ;;  %v40_v0 = vld [vmem:[#allocation2] sm:$0xff]  ;;  %v41_v1 = vld [vmem:[#allocation5] sm:$0xff]  ;;  %s53_s22 = int_to_ptr.hbm [resolvable:$true] %s52_s22 }
   0xc   :  { %s50_s0 = sshll.u32 %s146_s19, 4  ;;  %vm43_vm0 = vcmask 523264   ;;  %v42_v2 = vadd.f32 %v41_v1, %v40_v0  ;;  %s51_s0 = int_to_ptr.vmem [resolvable:$true] %s50_s0 }
   0xe   :  { %44 = vst.msk [vmem:[#allocation7] sm:$0xff] %vm43_vm0, %v42_v2 }
   0xf   :  { %55 = dma.vmem_to_hbm [thread:$0]  %s51_s0, 128, %s53_s22, [#allocation4]  }
  0x10   :  { %142 = dma.done.wait [#allocation4], 128  }
  0x11   :  { %143 = vsyncadd [#allocation4], 4294967168 }
  0x12   :  { %60 = vsyncpa [#allocation3], 1 }
  0x13   :  { %61 = vsyncpa [#allocation6], 1 }
  0x14   :  { %62 = vsyncpa [#allocation4], 1 }

</bundles_post_ra>
